<compile_context>
chip_gen: v7x
topology: tpu7x:2x2x1
jax: 0.10.0
libtpu: 0.0.40
codegen_flags: <defaults>
</compile_context>

<pallas_src>
import numpy as np
import jax
import jax.numpy as jnp
from jax.experimental import pallas as pl
from jax.experimental.pallas import tpu as pltpu


def _round_up(v, m):
    return ((v + m - 1) // m) * m


# ---------------------------------------------------------------------------
# Pallas kernel: fused  OUT_g = A_eff_g @ (X_g @ W) + 2*b   per graph block,
# with a tiled reduction axis accumulated directly into the f32 output block.
# ---------------------------------------------------------------------------
def _gnn_fused_kernel(a_ref, x_ref, w_ref, b2_ref, out_ref):
    k = pl.program_id(2)

    @pl.when(k == 0)
    def _init():
        # Padded rows just hold the bias; they are sliced off on host.
        out_ref[...] = jnp.broadcast_to(b2_ref[...], out_ref.shape)

    gpg, tk, d_pad = x_ref.shape
    # XW chunk for this reduction slice, computed in VMEM (never hits HBM).
    xw = jnp.dot(x_ref[...].reshape(gpg * tk, d_pad), w_ref[...],
                 preferred_element_type=jnp.float32)
    xw = xw.reshape(gpg, tk, -1).astype(a_ref.dtype)
    # Per-graph (batched) aggregation with the folded operator, f32 accumulate.
    out_ref[...] += jnp.einsum("gmk,gkh->gmh", a_ref[...], xw,
                               preferred_element_type=jnp.float32)


# ---------------------------------------------------------------------------
# Generation-aware tiling / padding plan.
# ---------------------------------------------------------------------------
def _vmem_capacity_bytes():
    try:
        cap = int(pltpu.get_tpu_info().vmem_capacity_bytes)
        if cap > 0:
            return cap
    except Exception:
        pass
    return 64 << 20  # conservative (v7x-class) default


def _plan_tiles(n_max, n_graphs, d, h, itemsize):
    """Choose graphs/step (gpg), row tile tm, reduction tile tk, padded dims."""
    d_pad = _round_up(d, 128)
    h_pad = _round_up(h, 128)
    cap = _vmem_capacity_bytes()
    budget = max(16 << 20, min(cap * 3 // 4, cap - (24 << 20)))
    big_vmem = cap >= (96 << 20)          # v5e / v6e (128 MiB) vs v7x (64 MiB)
    tile_cap = 512 if big_vmem else 256
    target_rows = 512 if big_vmem else 256

    def need(gpg, tm, tk):
        return (2 * gpg * tm * tk * itemsize       # A blocks (double-buffered)
                + 2 * gpg * tk * d_pad * itemsize  # X blocks
                + 2 * d_pad * h_pad * itemsize     # W (grid-invariant, tiny)
                + 2 * h_pad * 4                    # bias
                + 2 * gpg * tm * h_pad * 4         # f32 output/accumulator
                + gpg * tk * h_pad * 4)            # in-kernel XW chunk

    # Mode 1: whole graph per tile, several graphs per grid step.
    n8 = _round_up(max(n_max, 8), 8)
    gpg = max(1, min(n_graphs, target_rows // n8))
    while gpg > 1 and need(gpg, n8, n8) > budget:
        gpg = max(1, gpg // 2)
    if need(gpg, n8, n8) <= budget:
        return dict(gpg=gpg, tm=n8, tk=n8, n_pad=n8, d_pad=d_pad, h_pad=h_pad,
                    vmem=need(gpg, n8, n8), budget=budget)

    # Mode 2: one (large) graph per step, tiled rows + tiled reduction, so
    # VMEM stays independent of the graph size.
    tile = tile_cap
    while tile > 128 and need(1, tile, tile) > budget:
        tile //= 2
    n_pad = _round_up(n_max, tile)
    return dict(gpg=1, tm=tile, tk=tile, n_pad=n_pad, d_pad=d_pad, h_pad=h_pad,
                vmem=need(1, tile, tile), budget=budget)


def run_gnn_kernel(a_packed, x_packed, w_p, b2_p, plan):
    Gp, n_pad, _ = a_packed.shape
    d_pad = x_packed.shape[-1]
    h_pad = w_p.shape[-1]
    gpg, tm, tk = plan["gpg"], plan["tm"], plan["tk"]
    grid = (Gp // gpg, n_pad // tm, n_pad // tk)

    return pl.pallas_call(
        _gnn_fused_kernel,
        out_shape=jax.ShapeDtypeStruct((Gp, n_pad, h_pad), jnp.float32),
        grid=grid,
        in_specs=[
            pl.BlockSpec((gpg, tm, tk), lambda g, i, k: (g, i, k)),
            pl.BlockSpec((gpg, tk, d_pad), lambda g, i, k: (g, k, 0)),
            pl.BlockSpec((d_pad, h_pad), lambda g, i, k: (0, 0)),
            pl.BlockSpec((1, 1, h_pad), lambda g, i, k: (0, 0, 0)),
        ],
        out_specs=pl.BlockSpec((gpg, tm, h_pad), lambda g, i, k: (g, i, 0)),
        compiler_params=pltpu.CompilerParams(
            dimension_semantics=("parallel", "parallel", "arbitrary"),
            vmem_limit_bytes=int(max(plan["budget"], plan["vmem"])),
        ),
    )(a_packed, x_packed, w_p, b2_p)


# ---------------------------------------------------------------------------
# Host-side graph construction (spans2tree, per-graph folded operators).
# ---------------------------------------------------------------------------
def spans2tree(spans):
    """Parent = index of the smallest strictly-enclosing span, else -1."""
    parents = []
    for i, (l, r) in enumerate(spans):
        best, best_len = -1, None
        for j, (l2, r2) in enumerate(spans):
            if j == i:
                continue
            if l2 <= l and r <= r2 and (r2 - l2) > (r - l):
                if best_len is None or (r2 - l2) < best_len:
                    best, best_len = j, (r2 - l2)
        parents.append(best)
    return parents


def build_gnn_input_packed(spans_inp, x, plan, compute_dtype):
    """Per-graph packed vertex features and folded effective adjacency blocks.

    A_eff_g = (I + 11^T/n_g) @ D^-1/2 (A_g + I) D^-1/2  folds the GCN degree
    normalization AND the mean-pool broadcast into one per-graph operator, so
    the device computes OUT_g = A_eff_g @ (X_g @ W) + 2*b.
    """
    x_np = np.asarray(jax.device_get(x), np.float64)
    n_graphs = len(spans_inp)
    Gp = _round_up(n_graphs, plan["gpg"])
    n_pad, d_pad = plan["n_pad"], plan["d_pad"]
    d = x_np.shape[-1]
    cdt = np.dtype(compute_dtype)

    # Packed buffers built on host, already padded, already in compute dtype
    # (no device-side pad/cast pass over the big operator).
    a_packed = np.zeros((Gp, n_pad, n_pad), cdt)
    x_packed = np.zeros((Gp, n_pad, d_pad), cdt)

    parents_all, verts_all, ops_all = [], [], []
    for g, spans_item in enumerate(spans_inp):
        ng = len(spans_item)
        parents_item = spans2tree(spans_item)
        parents_all.append(parents_item)

        l_idx = np.array([s[0] for s in spans_item], np.int64)
        r_idx = np.array([s[1] - 1 for s in spans_item], np.int64)
        verts = x_np[g, l_idx] + x_np[g, r_idx]            # [ng, d]  f64
        verts_all.append(verts)

        adj = np.eye(ng, dtype=np.float64)                 # A + I (self loops)
        for i, p in enumerate(parents_item):
            if p != -1:
                adj[i, p] = 1.0
                adj[p, i] = 1.0
        dinv = 1.0 / np.sqrt(adj.sum(axis=1))
        a_norm = adj * dinv[:, None] * dinv[None, :]
        a_eff = (np.eye(ng) + np.full((ng, ng), 1.0 / ng)) @ a_norm
        ops_all.append((a_norm, a_eff))

        a_packed[g, :ng, :ng] = a_eff.astype(cdt)
        x_packed[g, :ng, :d] = verts.astype(cdt)

    meta = {
        "spans": spans_inp,
        "parents": parents_all,
        "length": [len(s) for s in spans_inp],
        "verts": verts_all,
        "ops": ops_all,
    }
    return a_packed, x_packed, meta


def general_gnn_forward(x, lens, spans, w, b, *, compute_dtype=jnp.bfloat16):
    del lens  # lengths are implied by the span lists (matches reference usage)
    d = x.shape[-1]
    h = w.shape[1]
    n_max = max(len(s) for s in spans)
    itemsize = int(np.dtype(compute_dtype).itemsize)
    plan = _plan_tiles(n_max, len(spans), d, h, itemsize)

    a_packed_np, x_packed_np, meta = build_gnn_input_packed(
        spans, x, plan, compute_dtype)

    cdt = np.dtype(compute_dtype)
    w_np = np.asarray(jax.device_get(w), np.float64)
    b_np = np.asarray(jax.device_get(b), np.float64).reshape(-1)
    w_p = np.zeros((plan["d_pad"], plan["h_pad"]), cdt)
    w_p[:d, :h] = w_np.astype(cdt)
    b2_p = np.zeros((1, 1, plan["h_pad"]), np.float32)
    b2_p[0, 0, :h] = 2.0 * b_np                 # pool rows sum to 1 -> 2*b

    out = run_gnn_kernel(
        jnp.asarray(a_packed_np), jnp.asarray(x_packed_np),
        jnp.asarray(w_p), jnp.asarray(b2_p), plan)

    # postprocess_gnn_output; global-pool broadcast already folded -> just split.
    splitted = [out[g, :ng, :h] for g, ng in enumerate(meta["length"])]
    return splitted, meta["spans"], (meta, out, plan)


# ---------------------------------------------------------------------------
# Self-test.
# ---------------------------------------------------------------------------
if __name__ == "__main__":
    key = jax.random.PRNGKey(0)
    k_x, k_w, k_b = jax.random.split(key, 3)

    batch, seq, dim, hidden = 2, 8, 32, 32
    x = jax.random.normal(k_x, (batch, seq, dim), dtype=jnp.float32)
    w = jax.random.normal(k_w, (dim, hidden), dtype=jnp.float32) * 0.1
    b = jax.random.normal(k_b, (1, hidden), dtype=jnp.float32) * 0.1
    lens = [seq, seq]

    spans = [
        [(0, 8), (0, 4), (4, 8), (0, 2), (2, 4), (4, 6), (6, 8)],  # 7 nodes
        [(0, 8), (0, 4), (4, 8), (0, 2), (2, 4)],                  # 5 nodes
    ]

    # --- bf16 storage path (MXU-native on v6e/v7x) ---------------------------
    split_bf16, out_spans, (meta, out_bf16, plan) = general_gnn_forward(
        x, lens, spans, w, b, compute_dtype=jnp.bfloat16)
    jax.block_until_ready(out_bf16)

    # --- f32 storage path -----------------------------------------------------
    split_f32, _, (_, out_f32, _) = general_gnn_forward(
        x, lens, spans, w, b, compute_dtype=jnp.float32)
    jax.block_until_ready(out_f32)

    # Float64 reference of the original (unfolded) GeneralGNN forward:
    # GCNConv -> per-graph mean pool -> broadcast add.
    w64 = np.asarray(jax.device_get(w), np.float64)
    b64 = np.asarray(jax.device_get(b), np.float64)
    for g, ng in enumerate(meta["length"]):
        a_norm, a_eff = meta["ops"][g]
        verts = meta["verts"][g]
        h_nodes = a_norm @ (verts @ w64) + b64
        ref = h_nodes + h_nodes.mean(axis=0, keepdims=True)

        # 1) host folding is exact algebra (f64).
        folded = a_eff @ (verts @ w64) + 2.0 * b64
        np.testing.assert_allclose(folded, ref, rtol=1e-9, atol=1e-9)

        # 2) kernel outputs vs the f64 reference (dtype-limited tolerances).
        np.testing.assert_allclose(np.asarray(split_f32[g]), ref,
                                   rtol=2e-2, atol=2e-2)
        np.testing.assert_allclose(np.asarray(split_bf16[g]), ref,
                                   rtol=5e-2, atol=5e-2)

    assert [tuple(s.shape) for s in split_bf16] == [(7, hidden), (5, hidden)]
    assert [tuple(s.shape) for s in split_f32] == [(7, hidden), (5, hidden)]
    assert out_spans == spans

    # TODO(synk): span_extractor branch (BucketedSpanExtractor) has no concrete
    # definition in the spec; the x[l] + x[r-1] vertex-building branch is used.
    print("KERNEL_OK")
</pallas_src>

<mosaic_0001>
module attributes {stable_mosaic.version = 11 : i64} {
  func.func @_gnn_fused_kernel(%arg0: i32, %arg1: i32, %arg2: i32, %arg3: memref<2x8x8xbf16, #tpu.memory_space<vmem>>, %arg4: memref<2x8x128xbf16, #tpu.memory_space<vmem>>, %arg5: memref<128x128xbf16, #tpu.memory_space<vmem>>, %arg6: memref<1x1x128xf32, #tpu.memory_space<vmem>>, %arg7: memref<2x8x128xf32, #tpu.memory_space<vmem>>) attributes {dimension_semantics = [#tpu.dimension_semantics<parallel>, #tpu.dimension_semantics<parallel>, #tpu.dimension_semantics<arbitrary>], iteration_bounds = array<i64: 1, 1, 1>, scalar_prefetch = 0 : i64, scratch_operands = 0 : i64, tpu.core_type = #tpu.core_type<tc>, window_params = [{transform_indices = @transform_0, window_bounds = array<i64: 2, 8, 8>}, {transform_indices = @transform_1, window_bounds = array<i64: 2, 8, 128>}, {pipeline_mode = #tpu.pipeline_mode<synchronous>, transform_indices = @transform_2, window_bounds = array<i64: 128, 128>}, {pipeline_mode = #tpu.pipeline_mode<synchronous>, transform_indices = @transform_3, window_bounds = array<i64: 1, 1, 128>}, {transform_indices = @transform_4, window_bounds = array<i64: 2, 8, 128>}]} {
    %c0_i32 = arith.constant 0 : i32
    %0 = arith.cmpi eq, %arg2, %c0_i32 : i32
    %1 = arith.extui %0 : i1 to i32
    %c0_i32_0 = arith.constant 0 : i32
    %2 = arith.cmpi ne, %1, %c0_i32_0 : i32
    scf.if %2 {
      %c0_15 = arith.constant 0 : index
      %c0_16 = arith.constant 0 : index
      %c0_17 = arith.constant 0 : index
      %14 = vector.load %arg6[%c0_15, %c0_16, %c0_17] : memref<1x1x128xf32, #tpu.memory_space<vmem>>, vector<1x1x128xf32>
      %15 = vector.shape_cast %14 : vector<1x1x128xf32> to vector<1x1x128xf32>
      %16 = vector.broadcast %15 : vector<1x1x128xf32> to vector<2x8x128xf32>
      %c0_18 = arith.constant 0 : index
      %c0_19 = arith.constant 0 : index
      %c0_20 = arith.constant 0 : index
      %17 = vector.load %arg7[%c0_18, %c0_19, %c0_20] : memref<2x8x128xf32, #tpu.memory_space<vmem>>, vector<2x8x128xf32>
      tpu.vector_store %arg7[%c0_18, %c0_19, %c0_20], %16 {strides = array<i32>} : memref<2x8x128xf32, #tpu.memory_space<vmem>>, vector<2x8x128xf32>,
    } else {
    }
    %c0 = arith.constant 0 : index
    %c0_1 = arith.constant 0 : index
    %c0_2 = arith.constant 0 : index
    %3 = vector.load %arg4[%c0, %c0_1, %c0_2] : memref<2x8x128xbf16, #tpu.memory_space<vmem>>, vector<2x8x128xbf16>
    %4 = vector.shape_cast %3 : vector<2x8x128xbf16> to vector<16x128xbf16>
    %c0_3 = arith.constant 0 : index
    %c0_4 = arith.constant 0 : index
    %5 = vector.load %arg5[%c0_3, %c0_4] : memref<128x128xbf16, #tpu.memory_space<vmem>>, vector<128x128xbf16>
    %cst = arith.constant dense<0.000000e+00> : vector<16x128xf32>
    %6 = tpu.matmul %4, %5, %cst {dimension_numbers = #tpu.dot_dimension_numbers<[1], [0], [0], [1], [0, 0, 1, 1], [], []>} : vector<16x128xbf16>, vector<128x128xbf16>, vector<16x128xf32> -> vector<16x128xf32>
    %7 = vector.shape_cast %6 : vector<16x128xf32> to vector<2x8x128xf32>
    %8 = arith.truncf %7 : vector<2x8x128xf32> to vector<2x8x128xbf16>
    %c0_5 = arith.constant 0 : index
    %c0_6 = arith.constant 0 : index
    %c0_7 = arith.constant 0 : index
    %9 = vector.load %arg7[%c0_5, %c0_6, %c0_7] : memref<2x8x128xf32, #tpu.memory_space<vmem>>, vector<2x8x128xf32>
    %c0_8 = arith.constant 0 : index
    %c0_9 = arith.constant 0 : index
    %c0_10 = arith.constant 0 : index
    %10 = vector.load %arg3[%c0_8, %c0_9, %c0_10] : memref<2x8x8xbf16, #tpu.memory_space<vmem>>, vector<2x8x8xbf16>
    "tpu.trace_start"() <{level = 10 : i32, message = "gmk,gkh->gmh"}> : () -> ()
    %cst_11 = arith.constant dense<0.000000e+00> : vector<2x8x128xf32>
    %11 = tpu.matmul %10, %8, %cst_11 {dimension_numbers = #tpu.dot_dimension_numbers<[2], [1], [1], [2], [0, 0, 0, 1, 1, 2], [0], [0]>} : vector<2x8x8xbf16>, vector<2x8x128xbf16>, vector<2x8x128xf32> -> vector<2x8x128xf32>
    "tpu.trace_stop"() : () -> ()
    %12 = arith.addf %9, %11 : vector<2x8x128xf32>
    %c0_12 = arith.constant 0 : index
    %c0_13 = arith.constant 0 : index
    %c0_14 = arith.constant 0 : index
    %13 = vector.load %arg7[%c0_12, %c0_13, %c0_14] : memref<2x8x128xf32, #tpu.memory_space<vmem>>, vector<2x8x128xf32>
    tpu.vector_store %arg7[%c0_12, %c0_13, %c0_14], %12 {strides = array<i32>} : memref<2x8x128xf32, #tpu.memory_space<vmem>>, vector<2x8x128xf32>,
    return
  }
  func.func @transform_0(%arg0: i32, %arg1: i32, %arg2: i32) -> (i32, i32, i32) {
    %c0_i32 = arith.constant 0 : i32
    return %arg0, %arg1, %arg2 : i32, i32, i32
  }
  func.func @transform_1(%arg0: i32, %arg1: i32, %arg2: i32) -> (i32, i32, i32) {
    %c0_i32 = arith.constant 0 : i32
    %c0_i32_0 = arith.constant 0 : i32
    return %arg0, %arg2, %c0_i32 : i32, i32, i32
  }
  func.func @transform_2(%arg0: i32, %arg1: i32, %arg2: i32) -> (i32, i32) {
    %c0_i32 = arith.constant 0 : i32
    %c0_i32_0 = arith.constant 0 : i32
    %c0_i32_1 = arith.constant 0 : i32
    return %c0_i32, %c0_i32_0 : i32, i32
  }
  func.func @transform_3(%arg0: i32, %arg1: i32, %arg2: i32) -> (i32, i32, i32) {
    %c0_i32 = arith.constant 0 : i32
    %c0_i32_0 = arith.constant 0 : i32
    %c0_i32_1 = arith.constant 0 : i32
    %c0_i32_2 = arith.constant 0 : i32
    return %c0_i32, %c0_i32_0, %c0_i32_1 : i32, i32, i32
  }
  func.func @transform_4(%arg0: i32, %arg1: i32, %arg2: i32) -> (i32, i32, i32) {
    %c0_i32 = arith.constant 0 : i32
    %c0_i32_0 = arith.constant 0 : i32
    return %arg0, %arg1, %c0_i32 : i32, i32, i32
  }
}

</mosaic_0001>

<bundles_post_ra>
// kernel: tpu_custom_call.1
= control target key start
LH: loop header
LB: loop body
LE: loop exit
PB: predicated region body
PF: predicated region fallthrough
CT: control target
= control target key end

     0   :  { %9 = vsyncpa [#allocation3], 0  ;;  %s583_s0 = inlined_call_operand.hbm [shape: bf16[2,8,8], index: 0, kind: input, shape index: {}]   ;;  %s584_s1 = inlined_call_operand.hbm [shape: bf16[2,8,128], index: 1, kind: input, shape index: {}]   ;;  %s585_s2 = inlined_call_operand.hbm [shape: bf16[128,128], index: 2, kind: input, shape index: {}]   ;;  %s586_s3 = inlined_call_operand.vmem [shape: f32[1,1,128], index: 3, kind: input, shape index: {}]   ;;  %s587_s4 = inlined_call_operand.hbm [shape: f32[2,8,128], index: 4, kind: output, shape index: {}]  }
   0x1   :  { %10 = vsyncpa [#allocation6], 0 }
   0x2   :  { %11 = vsyncpa [#allocation4], 0  ;;  %s478_s15 = smov [#allocation5]   ;;  %s479_s17 = smov [#allocation2]  }
   0x3   :  { %s29_s16 = sshll.u32 %s478_s15, 4  ;;  %s17_s18 = sshll.u32 %s479_s17, 4  ;;  %s30_s16 = int_to_ptr.vmem [resolvable:$true] %s29_s16  ;;  %s513_s18 = int_to_ptr.vmem [resolvable:$true] %s17_s18 }
   0x4   :  { %s384_s21 = scalar_lea.hbm %s584_s1, 128 }
   0x5   :  { %p385_p0 = scmp.ne.s32.totalorder %s584_s1, %s384_s21  ;;  %p388_p1 = scmp.lt.u32.totalorder %s384_s21, %s584_s1 }
   0x7   :  { %p390_p2 = pnand %p388_p1, %p385_p0 }
   0x9   :  { %393 = shalt.err (!%p390_p2)
}
   0xa   :  { %s394_s26 = scalar_lea.vmem %s30_s16, 128  ;;  %p399_p4 = scmp.lt.s32.totalorder %s30_s16, %s30_s16 }
   0xb   :  { %p395_p3 = scmp.ne.s32.totalorder %s30_s16, %s394_s26  ;;  %p400_p5 = scmp.lt.s32.totalorder %s394_s26, %s394_s26 }
   0xd   :  { %p401_p6 = por %p400_p5, %p399_p4 }
   0xf   :  { %p402_p7 = pnand %p401_p6, %p395_p3 }
  0x11   :  { %405 = shalt.err (!%p402_p7)
}
  0x12   :  { %s480_s27 = smov 64   ;;  %s481_s28 = smov 4  }
  0x13   :  { %35 = dma.hbm_to_vmem [thread:$0]  %s584_s1, 128, %s30_s16, [#allocation6], %s480_s27, %s480_s27, %s481_s28  }
  0x14   :  { %s406_s7 = scalar_lea.hbm %s583_s0, 128 }
  0x15   :  { %p407_p8 = scmp.ne.s32.totalorder %s583_s0, %s406_s7  ;;  %p410_p9 = scmp.lt.u32.totalorder %s406_s7, %s583_s0 }
  0x17   :  { %p412_p10 = pnand %p410_p9, %p407_p8 }
  0x19   :  { %415 = shalt.err (!%p412_p10)
}
  0x1a   :  { %s416_s12 = scalar_lea.vmem %s513_s18, 128  ;;  %p421_p12 = scmp.lt.s32.totalorder %s513_s18, %s513_s18 }
  0x1b   :  { %p417_p11 = scmp.ne.s32.totalorder %s513_s18, %s416_s12  ;;  %p422_p13 = scmp.lt.s32.totalorder %s416_s12, %s416_s12 }
  0x1d   :  { %p423_p0 = por %p422_p13, %p421_p12 }
  0x1f   :  { %p424_p1 = pnand %p423_p0, %p417_p11 }
  0x21   :  { %427 = shalt.err (!%p424_p1)
}
  0x22   :  { %23 = dma.hbm_to_vmem [thread:$0]  %s583_s0, 128, %s513_s18, [#allocation3], %s480_s27, %s480_s27, %s481_s28  }
  0x23   :  { %s482_s14 = smov [#allocation7]   ;;  %s428_s19 = scalar_lea.hbm %s585_s2, 1024 }
  0x24   :  { %s41_s15 = sshll.u32 %s482_s14, 4  ;;  %p429_p2 = scmp.ne.s32.totalorder %s585_s2, %s428_s19  ;;  %s42_s15 = int_to_ptr.vmem [resolvable:$true] %s41_s15 }
  0x25   :  { %p432_p3 = scmp.lt.u32.totalorder %s428_s19, %s585_s2 }
  0x27   :  { %p434_p4 = pnand %p432_p3, %p429_p2 }
  0x29   :  { %437 = shalt.err (!%p434_p4)
}
  0x2a   :  { %s438_s24 = scalar_lea.vmem %s42_s15, 1024  ;;  %p443_p6 = scmp.lt.s32.totalorder %s42_s15, %s42_s15 }
  0x2b   :  { %p439_p5 = scmp.ne.s32.totalorder %s42_s15, %s438_s24  ;;  %p444_p7 = scmp.lt.s32.totalorder %s438_s24, %s438_s24 }
  0x2d   :  { %p445_p8 = por %p444_p7, %p443_p6 }
  0x2f   :  { %p446_p9 = pnand %p445_p8, %p439_p5 }
  0x31   :  { %449 = shalt.err (!%p446_p9)
}
  0x32   :  { %47 = dma.hbm_to_vmem [thread:$0]  %s585_s2, 1024, %s42_s15, [#allocation6], %s480_s27, %s480_s27, %s481_s28  }
  0x33   :  { %472 = dma.done.wait [#allocation3], 128  }
  0x34   :  { %473 = vsyncadd [#allocation3], 4294967168 }
  0x35   :  { %474 = dma.done.wait [#allocation6], 1152  }
  0x36   :  { %475 = vsyncadd [#allocation6], 4294966144  ;;  %v483_v0 = vmov 0.0   ;;  %vm484_vm0 = vmmov 0   ;;  %v375_v1 = vld [vmem:[#allocation7] sm:$0xff]   ;;  %v376_v2 = vld [vmem:[#allocation7 + $0x8] sm:$0xff]  }
  0x37   :  { %333 = vmatprep.subr.bf16.mxu0 %v483_v0  ;;  %349 = vmatprep.mubr.msk.bf16.mxu0 %vm484_vm0, %v483_v0  ;;  %v377_v3 = vld [vmem:[#allocation7 + $0x10] sm:$0xff]   ;;  %v378_v4 = vld [vmem:[#allocation7 + $0x18] sm:$0xff]   ;;  %v379_v5 = vld [vmem:[#allocation7 + $0x20] sm:$0xff]   ;;  %vm196_vm1 = vcmask 1043456   ;;  %vm192_vm2 = vcmask 64512   ;;  %s485_s26 = smov [#allocation8]  }
  0x38   :  { %353 = vmatprep.subr.bf16.mxu1 %v483_v0  ;;  %355 = vmatprep.mubr.msk.bf16.mxu1 %vm484_vm0, %v483_v0  ;;  %v380_v6 = vld [vmem:[#allocation7 + $0x28] sm:$0xff]   ;;  %v381_v7 = vld [vmem:[#allocation7 + $0x30] sm:$0xff]   ;;  %v382_v8 = vld [vmem:[#allocation7 + $0x38] sm:$0xff]   ;;  %s295_s27 = sshll.u32 %s485_s26, 4  ;;  %s296_s27 = int_to_ptr.vmem [resolvable:$true] %s295_s27 }
  0x39   :  { %334 = vmatpush3.bf16.msra.mxu0 %v375_v1  ;;  %v383_v9 = vld [vmem:[#allocation5] sm:$0xff]   ;;  %v190_v17 = vld [vmem:[#allocation2] sm:$0xf]  ;;  %v191_v19 = vld [vmem:[#allocation2 + $0x4] sm:$0xf]  ;;  %s450_s28 = scalar_lea.vmem %s296_s27, 256  ;;  %p455_p11 = scmp.lt.s32.totalorder %s296_s27, %s296_s27 }
  0x3a   :  { %335 = vmatprep.subr.bf16.mxu0 %v483_v0  ;;  %v308_v20 = vld [vmem:[%s586_s3] ss:$0 sm:$0xff]  ;;  %p451_p10 = scmp.ne.s32.totalorder %s296_s27, %s450_s28  ;;  %p456_p12 = scmp.lt.s32.totalorder %s450_s28, %s450_s28 }
  0x3c   :  { %p457_p13 = por %p456_p12, %p455_p11 }
  0x3d   :  { %336 = vmatpush3.bf16.msra.mxu0 %v376_v2 }
  0x3e   :  { %337 = vmatprep.subr.bf16.mxu0 %v483_v0  ;;  %p458_p0 = pnand %p457_p13, %p451_p10 }
  0x41   :  { %338 = vmatpush3.bf16.msra.mxu0 %v377_v3 }
  0x42   :  { %339 = vmatprep.subr.bf16.mxu0 %v483_v0 }
  0x45   :  { %340 = vmatpush3.bf16.msra.mxu0 %v378_v4 }
  0x46   :  { %341 = vmatprep.subr.bf16.mxu0 %v483_v0 }
  0x49   :  { %342 = vmatpush3.bf16.msra.mxu0 %v379_v5 }
  0x4a   :  { %343 = vmatprep.subr.bf16.mxu0 %v483_v0 }
  0x4d   :  { %344 = vmatpush3.bf16.msra.mxu0 %v380_v6 }
  0x4e   :  { %345 = vmatprep.subr.bf16.mxu0 %v483_v0 }
  0x51   :  { %346 = vmatpush3.bf16.msra.mxu0 %v381_v7 }
  0x52   :  { %347 = vmatprep.subr.bf16.mxu0 %v483_v0 }
  0x55   :  { %348 = vmatpush3.bf16.msra.mxu0 %v382_v8 }
  0x58   :  { %350 = vmatmul.mubr.bf16.vlgmr.msra.gmra.mrb[0].mxu0 %v383_v9 }
 0x12b   :  { %v179_v10 = vpop.f32.mrb[0].mxu0 }
 0x12c   :  { %v186_v11 = vpack.c.bf16 %v179_v10, %v179_v10  ;;  %v351_v12 = vpop.f32.mrb[1].mxu0 }
 0x12d   :  { %v182_v13 = vpop.f32.mrb[2].mxu0 }
 0x12e   :  { %v187_v14 = vpack.c.bf16 %v182_v13, %v182_v13  ;;  %v352_v15 = vpop.f32.mrb[3].mxu0  ;;  %v198_v16 = vsel %vm196_vm1, %v186_v11, 0 }
 0x12f   :  { %354 = vmatpush3.bf16.msra.mxu1 %v198_v16 }
 0x130   :  { %359 = vmatprep.subr.bf16.mxu1 %v483_v0  ;;  %v244_v18 = vsel %vm196_vm1, %v187_v14, 0 }
 0x132   :  { %356 = vmatmul.mubr.msk.bf16.vlgmr.msra.gmra.mrb[0].mxu1 %vm192_vm2, %v190_v17 }
 0x133   :  { %360 = vmatpush3.bf16.msra.mxu1 %v244_v18  ;;  %361 = vmatprep.mubr.msk.bf16.mxu1 %vm484_vm0, %v483_v0 }
 0x13a   :  { %362 = vmatmul.mubr.msk.bf16.vlgmr.msra.gmra.mrb[4].mxu1 %vm192_vm2, %v191_v19 }
 0x205   :  { %v234_v21 = vpop.f32.mrb[0].mxu1 }
 0x206   :  { %v286_v22 = vadd.f32 %v308_v20, %v234_v21  ;;  %v357_v23 = vpop.f32.mrb[1].mxu1 }
 0x207   :  { %v237_v24 = vpop.f32.mrb[2].mxu1 }
 0x208   :  { %288 = vst [vmem:[#allocation8] sm:$0xff] %v286_v22  ;;  %v358_v25 = vpop.f32.mrb[3].mxu1 }
 0x20d   :  { %v280_v26 = vpop.f32.mrb[4].mxu1 }
 0x20e   :  { %v287_v27 = vadd.f32 %v308_v20, %v280_v26  ;;  %v363_v28 = vpop.f32.mrb[5].mxu1 }
 0x20f   :  { %v283_v29 = vpop.f32.mrb[6].mxu1 }
 0x210   :  { %289 = vst [vmem:[#allocation8 + $0x8] sm:$0xff] %v287_v27  ;;  %v364_v30 = vpop.f32.mrb[7].mxu1 }
 0x211   :  { %461 = shalt.err (!%p458_p0)
}
 0x212   :  { %s462_s30 = scalar_lea.hbm %s587_s4, 256 }
 0x213   :  { %p463_p1 = scmp.ne.s32.totalorder %s587_s4, %s462_s30  ;;  %p466_p2 = scmp.lt.u32.totalorder %s462_s30, %s587_s4 }
 0x215   :  { %p468_p3 = pnand %p466_p2, %p463_p1 }
 0x217   :  { %471 = shalt.err (!%p468_p3)
}
 0x218   :  { %s486_s9 = smov 128   ;;  %s487_s10 = smov 8  }
 0x219   :  { %301 = dma.vmem_to_hbm [thread:$0]  %s296_s27, 256, %s587_s4, [#allocation4], %s486_s9, %s486_s9, %s487_s10  }
 0x21a   :  { %476 = dma.done.wait [#allocation4], 256  }
 0x21b   :  { %477 = vsyncadd [#allocation4], 4294967040 }
 0x21c   :  { %305 = vsyncpa [#allocation3], 1 }
 0x21d   :  { %306 = vsyncpa [#allocation6], 1 }
 0x21e   :  { %307 = vsyncpa [#allocation4], 1 }

</bundles_post_ra>
